<compile_context>
chip_gen: v5e
topology: v5e:2x2
jax: 0.10.0
libtpu: 0.0.40
codegen_flags: <defaults>
</compile_context>

<pallas_src>
import functools

import jax
import jax.numpy as jnp
from jax.experimental import pallas as pl
from jax.experimental.pallas import tpu as pltpu


def _round_up(x, m):
    return -(-x // m) * m


def _vmem_budgets():
    """Per-generation (total scoped-VMEM limit, per-buffer feat-tile target) in bytes."""
    vmem_cap = None
    try:
        vmem_cap = pltpu.get_tpu_info().vmem_capacity_bytes
    except Exception:
        pass
    if vmem_cap is None:
        try:
            kind = jax.devices()[0].device_kind.lower()
        except Exception:
            kind = ""
        big_vmem = any(v in kind for v in ("v4", "v5", "v6"))
        vmem_cap = (128 << 20) if big_vmem else (64 << 20)
    if vmem_cap >= (128 << 20):
        # v5e/v6e: 128 MiB physical -> 96 MiB limit; 16 MiB feat tiles give >=6 us/step at
        # ~1.3 TB/s, fully hiding the ~0.35 us grid overhead and the finalize matmul.
        return 96 << 20, 16 << 20
    # v7x (64 MiB/TC) or unknown: ~48 MiB resident, 8 MiB feat tiles (HBM is ~2.3x faster
    # than v6e so the smaller tiles still amortize per-step overhead).
    return min(48 << 20, int(vmem_cap * 3 // 4)), 8 << 20


def _plan_tiles(N, R, F_pad, H_pad, C_pad, force_split_mlp=False):
    """Pick (tile_n, n_pad, tile_r, r_pad, fuse_mlp, vmem_limit) for the streaming reduction."""
    vmem_limit, feat_tile_target = _vmem_budgets()
    usable = int(vmem_limit * 0.85)          # headroom for Mosaic-internal scratch

    # f32 fc weights held via constant index maps (Pallas still allocates 2 buffers each).
    weight_res = 2 * 4 * (F_pad * H_pad + 8 * H_pad + H_pad * C_pad + 8 * C_pad)
    # Fuse the tiny MLP into the finalize only if its weights leave at least half the budget
    # for the streaming feat tiles that set the HBM roofline.
    fuse_mlp = (not force_split_mlp) and (weight_res <= usable // 2)

    def resident(tn, tr):
        return (2 * 2 * tn * tr * F_pad                         # double-buffered bf16 feat tile
                + 4 * tn * F_pad                                 # f32 accumulator scratch
                + 2 * 4 * tn * (C_pad if fuse_mlp else F_pad)    # double-buffered output block
                + (weight_res if fuse_mlp else 0))

    tile_n = min(128, _round_up(N, 8))
    n_pad = _round_up(N, tile_n)
    # (a) v7x megacore: keep >= 2 tiles on the "parallel" N axis when N allows it;
    # (b) shrink tile_n until the minimal (16-row) feat chunk fits the budget.
    while tile_n > 8 and (n_pad // tile_n < 2 or resident(tile_n, min(16, R)) > usable):
        tile_n //= 2
        n_pad = _round_up(N, tile_n)

    # Grow the reduction tile toward R so the feat DMA, not per-step grid overhead, dominates.
    per_buffer = max(tile_n * 16 * F_pad * 2,
                     min(feat_tile_target, (usable - resident(tile_n, 0)) // 2))
    tile_r_max = max(16, per_buffer // (tile_n * F_pad * 2) // 16 * 16)
    if tile_r_max >= R:
        tile_r, r_pad = R, R          # single chunk spans the full dim (no 8-divisibility needed)
    else:
        n_chunks = -(-R // tile_r_max)
        tile_r = _round_up(-(-R // n_chunks), 16)   # even-sized 16-aligned chunks -> least padding
        r_pad = n_chunks * tile_r
    return tile_n, n_pad, tile_r, r_pad, fuse_mlp, vmem_limit


def _accumulate(feat_ref, acc_ref):
    """Running f32 sum over one (M*T) reduction chunk (zero-padded rows contribute nothing)."""
    r = pl.program_id(1)

    @pl.when(r == 0)
    def _init():
        acc_ref[...] = jnp.zeros_like(acc_ref)

    # bf16 -> f32 widening adds (VALU) and the sublane reduce (XLU) hide fully under the DMA.
    acc_ref[...] += jnp.sum(feat_ref[...].astype(jnp.float32), axis=1)


def _fused_head_kernel(feat_ref, w1_ref, b1_ref, w2_ref, b2_ref, out_ref, acc_ref, *, inv_mt):
    """feat_ref: (tile_n, tile_r, F_pad) bf16; acc_ref: (tile_n, F_pad) f32."""
    _accumulate(feat_ref, acc_ref)

    @pl.when(pl.program_id(1) == pl.num_programs(1) - 1)
    def _finalize():
        pooled = acc_ref[...] * inv_mt                       # mean over M and T in one shot
        # fc1 (+ folded BatchNorm) -> ReLU -> fc2; f32 MXU accumulation, lane-dense dims.
        h = jnp.dot(pooled, w1_ref[...], preferred_element_type=jnp.float32) + b1_ref[...]
        h = jnp.maximum(h, 0.0)
        out = jnp.dot(h, w2_ref[...], preferred_element_type=jnp.float32) + b2_ref[...]
        out_ref[...] = out.astype(out_ref.dtype)


def _pool_kernel(feat_ref, out_ref, acc_ref, *, inv_mt):
    """Pooling-only variant used when the fc weights don't fit next to the feat pipeline."""
    _accumulate(feat_ref, acc_ref)

    @pl.when(pl.program_id(1) == pl.num_programs(1) - 1)
    def _finalize():
        out_ref[...] = (acc_ref[...] * inv_mt).astype(out_ref.dtype)


def action_head_pallas(feat, w1, b1, w2, b2, num_classes, *, force_split_mlp=False):
    """feat: (N, M*T, F) bf16.  w1:(F_pad,H_pad) b1:(1,H_pad) w2:(H_pad,C_pad) b2:(1,C_pad).

    Returns (N, num_classes) f32.
    """
    N, R, F = feat.shape
    F_pad, H_pad = w1.shape
    C_pad = w2.shape[1]

    tile_n, n_pad, tile_r, r_pad, fuse_mlp, vmem_limit = _plan_tiles(
        N, R, F_pad, H_pad, C_pad, force_split_mlp)

    # Padding happens here, right where feat is materialized (same jit as the backbone output),
    # so XLA fuses it into the producing fusion rather than making a standalone extra HBM copy.
    if (n_pad, r_pad, F_pad) != (N, R, F):
        feat = jnp.pad(feat, ((0, n_pad - N), (0, r_pad - R), (0, F_pad - F)))

    grid = (n_pad // tile_n, r_pad // tile_r)
    inv_mt = 1.0 / float(R)
    feat_spec = pl.BlockSpec((tile_n, tile_r, F_pad), lambda i, r: (i, r, 0))
    scratch = [pltpu.VMEM((tile_n, F_pad), jnp.float32)]
    cparams = pltpu.CompilerParams(dimension_semantics=("parallel", "arbitrary"),
                                   vmem_limit_bytes=vmem_limit)
    feat_bytes = n_pad * r_pad * F_pad * 2    # bf16 stream

    if fuse_mlp:
        cost = pl.CostEstimate(
            flops=2 * n_pad * (r_pad * F_pad + F_pad * H_pad + H_pad * C_pad),
            transcendentals=0,
            bytes_accessed=feat_bytes + 4 * (F_pad * H_pad + H_pad * C_pad + H_pad + C_pad
                                             + n_pad * C_pad))
        out = pl.pallas_call(
            functools.partial(_fused_head_kernel, inv_mt=inv_mt),
            out_shape=jax.ShapeDtypeStruct((n_pad, C_pad), jnp.float32),
            grid_spec=pltpu.PrefetchScalarGridSpec(
                num_scalar_prefetch=0,
                grid=grid,
                in_specs=[
                    feat_spec,                                          # tiled, pipelined stream
                    pl.BlockSpec((F_pad, H_pad), lambda i, r: (0, 0)),  # resident (no re-DMA)
                    pl.BlockSpec((1, H_pad), lambda i, r: (0, 0)),
                    pl.BlockSpec((H_pad, C_pad), lambda i, r: (0, 0)),
                    pl.BlockSpec((1, C_pad), lambda i, r: (0, 0)),
                ],
                out_specs=pl.BlockSpec((tile_n, C_pad), lambda i, r: (i, 0)),
                scratch_shapes=scratch),
            compiler_params=cparams,
            cost_estimate=cost,
        )(feat, w1, b1, w2, b2)
        return out[:N, :num_classes]

    # Weights too large to keep resident in VMEM (e.g. dim_rep=512/hidden=2048 on v7x): the
    # kernel streams/pools feat only; the tiny (N,F)@(F,H)@(H,C) MLP runs outside on pooled.
    cost = pl.CostEstimate(flops=2 * n_pad * r_pad * F_pad, transcendentals=0,
                           bytes_accessed=feat_bytes + 4 * n_pad * F_pad)
    pooled = pl.pallas_call(
        functools.partial(_pool_kernel, inv_mt=inv_mt),
        out_shape=jax.ShapeDtypeStruct((n_pad, F_pad), jnp.float32),
        grid_spec=pltpu.PrefetchScalarGridSpec(
            num_scalar_prefetch=0,
            grid=grid,
            in_specs=[feat_spec],
            out_specs=pl.BlockSpec((tile_n, F_pad), lambda i, r: (i, 0)),
            scratch_shapes=scratch),
        compiler_params=cparams,
        cost_estimate=cost,
    )(feat)[:N]
    # TODO(synk): for fc1 weights larger than VMEM a K-tiled Pallas matmul would be the next
    # step; the post-pool MLP is negligible next to streaming feat, so plain XLA handles it.
    h = jnp.maximum(pooled @ w1 + b1[0], 0.0)
    return (h @ w2 + b2[0])[:, :num_classes]


def prepare_head_params(params, f_in, hidden_dim, num_classes):
    """Fold eval-mode BatchNorm into fc1 and zero-pad all fc dims to lane-dense multiples of 128."""
    w1 = params['w1'] * params['bn_scale']                       # (F, H) * (1, H)
    b1 = params['b1'] * params['bn_scale'] + params['bn_shift']  # (1, H)
    w2, b2 = params['w2'], params['b2']

    f_pad = _round_up(f_in, 128)
    h_pad = _round_up(hidden_dim, 128)
    c_pad = _round_up(num_classes, 128)
    w1 = jnp.pad(w1, ((0, f_pad - f_in), (0, h_pad - hidden_dim)))
    b1 = jnp.pad(b1, ((0, 0), (0, h_pad - hidden_dim)))
    w2 = jnp.pad(w2, ((0, h_pad - hidden_dim), (0, c_pad - num_classes)))
    b2 = jnp.pad(b2, ((0, 0), (0, c_pad - num_classes)))
    return w1, b1, w2, b2


def action_net_forward(x, params, *, force_split_mlp=False):
    """x: (N, M, T, J, C_in) float32 -> (N, num_classes) float32."""
    N, M, T, J, _ = x.shape
    hidden_dim = params['w1'].shape[1]
    num_classes = params['w2'].shape[1]

    # TODO(synk): the real backbone is an external (nonlinear) module passed into ActionNet's
    # constructor; stand-in here is a deterministic per-joint linear projection C_in -> dim_rep
    # computed in plain JAX (glue). feat stays the kernel's input and the kernel grids/accumulates
    # over the (M*T) reduction axis, exactly as it would for a real backbone output.
    feat = jnp.einsum('nmtjc,cd->nmtjd', x, params['wb']) + params['bb']     # (N, M, T, J, D)
    D = feat.shape[-1]
    # Stream feat to the kernel in bf16 (halves HBM traffic); the kernel accumulates in f32.
    feat = feat.astype(jnp.bfloat16).reshape(N, M * T, J * D)   # joint-major flatten, as in PyTorch

    w1, b1, w2, b2 = prepare_head_params(params, J * D, hidden_dim, num_classes)
    return action_head_pallas(feat, w1, b1, w2, b2, num_classes,
                              force_split_mlp=force_split_mlp)


def init_params(key, c_in, dim_rep, num_joints, hidden_dim, num_classes):
    ks = jax.random.split(key, 10)
    F = dim_rep * num_joints
    wb = 0.1 * jax.random.normal(ks[0], (c_in, dim_rep), jnp.float32)
    bb = 0.1 * jax.random.normal(ks[1], (dim_rep,), jnp.float32)
    w1 = 0.02 * jax.random.normal(ks[2], (F, hidden_dim), jnp.float32)
    b1 = 0.02 * jax.random.normal(ks[3], (1, hidden_dim), jnp.float32)
    # BatchNorm1d (eval mode) parameters + running stats, folded to scale/shift.
    gamma = 1.0 + 0.1 * jax.random.normal(ks[4], (hidden_dim,), jnp.float32)
    beta = 0.1 * jax.random.normal(ks[5], (hidden_dim,), jnp.float32)
    running_mean = 0.05 * jax.random.normal(ks[6], (hidden_dim,), jnp.float32)
    running_var = 0.5 + jax.random.uniform(ks[7], (hidden_dim,), jnp.float32)
    eps = 1e-5
    scale = gamma / jnp.sqrt(running_var + eps)
    shift = beta - running_mean * scale
    w2 = 0.02 * jax.random.normal(ks[8], (hidden_dim, num_classes), jnp.float32)
    b2 = 0.02 * jax.random.normal(ks[9], (1, num_classes), jnp.float32)
    return dict(
        wb=wb, bb=bb, w1=w1, b1=b1,
        bn_scale=scale.reshape(1, hidden_dim), bn_shift=shift.reshape(1, hidden_dim),
        w2=w2, b2=b2,
    )


def reference_forward(x, params):
    """Pure-JAX reference mirroring the PyTorch forward literally (all-f32)."""
    N, M, T, J, _ = x.shape
    feat = jnp.einsum('nmtjc,cd->nmtjd', x, params['wb']) + params['bb']
    # dropout(p=0.0) == identity
    feat = jnp.transpose(feat, (0, 1, 3, 4, 2))       # (N, M, J, C, T)
    feat = jnp.mean(feat, axis=-1)                    # (N, M, J, C)
    feat = feat.reshape(N, M, -1)                     # (N, M, J*C) J-major
    feat = jnp.mean(feat, axis=1)                     # (N, J*C)
    h = feat @ params['w1'] + params['b1'][0]
    h = h * params['bn_scale'][0] + params['bn_shift'][0]
    h = jnp.maximum(h, 0.0)
    return h @ params['w2'] + params['b2'][0]


if __name__ == "__main__":
    # Small shapes consistent with the module: (N, M, T, J, C_in)
    N, M, T, J, C_in = 2, 2, 8, 17, 3
    dim_rep, hidden_dim, num_classes = 32, 64, 16

    key = jax.random.PRNGKey(0)
    kx, kp = jax.random.split(key)
    x = jax.random.normal(kx, (N, M, T, J, C_in), jnp.float32)
    params = init_params(kp, C_in, dim_rep, J, hidden_dim, num_classes)

    ref = jax.block_until_ready(reference_forward(x, params))

    # Fused path (weights resident in VMEM next to the streaming feat tiles).
    out = jax.block_until_ready(jax.jit(action_net_forward)(x, params))
    assert out.shape == (N, num_classes), out.shape
    assert out.dtype == jnp.float32
    assert jnp.allclose(out, ref, rtol=5e-3, atol=5e-3), \
        f"max abs diff = {jnp.max(jnp.abs(out - ref))}"

    # Also exercise the split-MLP path (taken automatically when the fc weights exceed the
    # per-TC VMEM budget, e.g. dim_rep=512/hidden=2048 on v7x's 64 MiB VMEM).
    out_split = jax.block_until_ready(
        jax.jit(functools.partial(action_net_forward, force_split_mlp=True))(x, params))
    assert jnp.allclose(out_split, ref, rtol=5e-3, atol=5e-3), \
        f"max abs diff (split path) = {jnp.max(jnp.abs(out_split - ref))}"

    print("KERNEL_OK")
</pallas_src>

<mosaic_0001>
module attributes {stable_mosaic.version = 11 : i64} {
  func.func @_fused_head_kernel(%arg0: i32, %arg1: i32, %arg2: memref<8x16x640xbf16, #tpu.memory_space<vmem>>, %arg3: memref<640x128xf32, #tpu.memory_space<vmem>>, %arg4: memref<1x128xf32, #tpu.memory_space<vmem>>, %arg5: memref<128x128xf32, #tpu.memory_space<vmem>>, %arg6: memref<1x128xf32, #tpu.memory_space<vmem>>, %arg7: memref<8x128xf32, #tpu.memory_space<vmem>>, %arg8: memref<8x640xf32, #tpu.memory_space<vmem>>) attributes {dimension_semantics = [#tpu.dimension_semantics<parallel>, #tpu.dimension_semantics<arbitrary>], iteration_bounds = array<i64: 1, 1>, scalar_prefetch = 0 : i64, scratch_operands = 1 : i64, tpu.core_type = #tpu.core_type<tc>, window_params = [{transform_indices = @transform_0, window_bounds = array<i64: 8, 16, 640>}, {pipeline_mode = #tpu.pipeline_mode<synchronous>, transform_indices = @transform_1, window_bounds = array<i64: 640, 128>}, {pipeline_mode = #tpu.pipeline_mode<synchronous>, transform_indices = @transform_2, window_bounds = array<i64: 1, 128>}, {pipeline_mode = #tpu.pipeline_mode<synchronous>, transform_indices = @transform_3, window_bounds = array<i64: 128, 128>}, {pipeline_mode = #tpu.pipeline_mode<synchronous>, transform_indices = @transform_4, window_bounds = array<i64: 1, 128>}, {transform_indices = @transform_5, window_bounds = array<i64: 8, 128>}]} {
    %c0_i32 = arith.constant 0 : i32
    %0 = arith.cmpi eq, %arg1, %c0_i32 : i32
    %1 = arith.extui %0 : i1 to i32
    %c0_i32_0 = arith.constant 0 : i32
    %2 = arith.cmpi ne, %1, %c0_i32_0 : i32
    scf.if %2 {
      %cst_9 = arith.constant 0.000000e+00 : f32
      %12 = vector.broadcast %cst_9 : f32 to vector<8x640xf32>
      %c0_10 = arith.constant 0 : index
      %c0_11 = arith.constant 0 : index
      %13 = vector.load %arg8[%c0_10, %c0_11] : memref<8x640xf32, #tpu.memory_space<vmem>>, vector<8x640xf32>
      tpu.vector_store %arg8[%c0_10, %c0_11], %12 {strides = array<i32>} : memref<8x640xf32, #tpu.memory_space<vmem>>, vector<8x640xf32>,
    } else {
    }
    %c0 = arith.constant 0 : index
    %c0_1 = arith.constant 0 : index
    %3 = vector.load %arg8[%c0, %c0_1] : memref<8x640xf32, #tpu.memory_space<vmem>>, vector<8x640xf32>
    %c0_2 = arith.constant 0 : index
    %c0_3 = arith.constant 0 : index
    %c0_4 = arith.constant 0 : index
    %4 = vector.load %arg2[%c0_2, %c0_3, %c0_4] : memref<8x16x640xbf16, #tpu.memory_space<vmem>>, vector<8x16x640xbf16>
    %5 = arith.extf %4 : vector<8x16x640xbf16> to vector<8x16x640xf32>
    %cst = arith.constant dense<0.000000e+00> : vector<8x640xf32>
    %6 = vector.multi_reduction <add>, %5, %cst [1] : vector<8x16x640xf32> to vector<8x640xf32>
    %7 = arith.addf %3, %6 : vector<8x640xf32>
    %c0_5 = arith.constant 0 : index
    %c0_6 = arith.constant 0 : index
    %8 = vector.load %arg8[%c0_5, %c0_6] : memref<8x640xf32, #tpu.memory_space<vmem>>, vector<8x640xf32>
    tpu.vector_store %arg8[%c0_5, %c0_6], %7 {strides = array<i32>} : memref<8x640xf32, #tpu.memory_space<vmem>>, vector<8x640xf32>,
    %c0_i32_7 = arith.constant 0 : i32
    %9 = arith.cmpi eq, %arg1, %c0_i32_7 : i32
    %10 = arith.extui %9 : i1 to i32
    %c0_i32_8 = arith.constant 0 : i32
    %11 = arith.cmpi ne, %10, %c0_i32_8 : i32
    scf.if %11 {
      %c0_9 = arith.constant 0 : index
      %c0_10 = arith.constant 0 : index
      %12 = vector.load %arg8[%c0_9, %c0_10] : memref<8x640xf32, #tpu.memory_space<vmem>>, vector<8x640xf32>
      %cst_11 = arith.constant 6.250000e-02 : f32
      %13 = vector.broadcast %cst_11 : f32 to vector<8x640xf32>
      %14 = arith.mulf %12, %13 : vector<8x640xf32>
      %c0_12 = arith.constant 0 : index
      %c0_13 = arith.constant 0 : index
      %15 = vector.load %arg3[%c0_12, %c0_13] : memref<640x128xf32, #tpu.memory_space<vmem>>, vector<640x128xf32>
      %cst_14 = arith.constant dense<0.000000e+00> : vector<8x128xf32>
      %16 = tpu.matmul %14, %15, %cst_14 {dimension_numbers = #tpu.dot_dimension_numbers<[1], [0], [0], [1], [0, 0, 1, 1], [], []>} : vector<8x640xf32>, vector<640x128xf32>, vector<8x128xf32> -> vector<8x128xf32>
      %c0_15 = arith.constant 0 : index
      %c0_16 = arith.constant 0 : index
      %17 = vector.load %arg4[%c0_15, %c0_16] : memref<1x128xf32, #tpu.memory_space<vmem>>, vector<1x128xf32>
      %18 = vector.broadcast %17 : vector<1x128xf32> to vector<8x128xf32>
      %19 = arith.addf %16, %18 : vector<8x128xf32>
      %cst_17 = arith.constant 0.000000e+00 : f32
      %20 = vector.broadcast %cst_17 : f32 to vector<8x128xf32>
      %21 = arith.maximumf %19, %20 : vector<8x128xf32>
      %c0_18 = arith.constant 0 : index
      %c0_19 = arith.constant 0 : index
      %22 = vector.load %arg5[%c0_18, %c0_19] : memref<128x128xf32, #tpu.memory_space<vmem>>, vector<128x128xf32>
      %cst_20 = arith.constant dense<0.000000e+00> : vector<8x128xf32>
      %23 = tpu.matmul %21, %22, %cst_20 {dimension_numbers = #tpu.dot_dimension_numbers<[1], [0], [0], [1], [0, 0, 1, 1], [], []>} : vector<8x128xf32>, vector<128x128xf32>, vector<8x128xf32> -> vector<8x128xf32>
      %c0_21 = arith.constant 0 : index
      %c0_22 = arith.constant 0 : index
      %24 = vector.load %arg6[%c0_21, %c0_22] : memref<1x128xf32, #tpu.memory_space<vmem>>, vector<1x128xf32>
      %25 = vector.broadcast %24 : vector<1x128xf32> to vector<8x128xf32>
      %26 = arith.addf %23, %25 : vector<8x128xf32>
      %c0_23 = arith.constant 0 : index
      %c0_24 = arith.constant 0 : index
      %27 = vector.load %arg7[%c0_23, %c0_24] : memref<8x128xf32, #tpu.memory_space<vmem>>, vector<8x128xf32>
      tpu.vector_store %arg7[%c0_23, %c0_24], %26 {strides = array<i32>} : memref<8x128xf32, #tpu.memory_space<vmem>>, vector<8x128xf32>,
    } else {
    }
    return
  }
  func.func @transform_0(%arg0: i32, %arg1: i32) -> (i32, i32, i32) {
    %c0_i32 = arith.constant 0 : i32
    %c0_i32_0 = arith.constant 0 : i32
    return %arg0, %arg1, %c0_i32 : i32, i32, i32
  }
  func.func @transform_1(%arg0: i32, %arg1: i32) -> (i32, i32) {
    %c0_i32 = arith.constant 0 : i32
    %c0_i32_0 = arith.constant 0 : i32
    %c0_i32_1 = arith.constant 0 : i32
    return %c0_i32, %c0_i32_0 : i32, i32
  }
  func.func @transform_2(%arg0: i32, %arg1: i32) -> (i32, i32) {
    %c0_i32 = arith.constant 0 : i32
    %c0_i32_0 = arith.constant 0 : i32
    %c0_i32_1 = arith.constant 0 : i32
    return %c0_i32, %c0_i32_0 : i32, i32
  }
  func.func @transform_3(%arg0: i32, %arg1: i32) -> (i32, i32) {
    %c0_i32 = arith.constant 0 : i32
    %c0_i32_0 = arith.constant 0 : i32
    %c0_i32_1 = arith.constant 0 : i32
    return %c0_i32, %c0_i32_0 : i32, i32
  }
  func.func @transform_4(%arg0: i32, %arg1: i32) -> (i32, i32) {
    %c0_i32 = arith.constant 0 : i32
    %c0_i32_0 = arith.constant 0 : i32
    %c0_i32_1 = arith.constant 0 : i32
    return %c0_i32, %c0_i32_0 : i32, i32
  }
  func.func @transform_5(%arg0: i32, %arg1: i32) -> (i32, i32) {
    %c0_i32 = arith.constant 0 : i32
    %c0_i32_0 = arith.constant 0 : i32
    return %arg0, %c0_i32 : i32, i32
  }
}

</mosaic_0001>

<bundles_post_ra>
// kernel: action_net_forward.1
= control target key start
LH: loop header
LB: loop body
LE: loop exit
PB: predicated region body
PF: predicated region fallthrough
CT: control target
= control target key end

     0   :  { %vm482_vm0 = vcmask 1041409   ;;  %vm484_vm1 = vcmask 1042434   ;;  %vm486_vm2 = vcmask 1043459   ;;  %vm488_vm3 = vcmask 1044484   ;;  %s1433_s1 = inlined_call_operand.vmem [shape: f32[640,128], index: 1, kind: input, shape index: {}]   ;;  %s1434_s0 = inlined_call_operand.vmem [shape: bf16[8,16,640], index: 0, kind: input, shape index: {}]   ;;  %s1435_s2 = inlined_call_operand.vmem [shape: f32[1,128], index: 2, kind: input, shape index: {}]   ;;  %s1436_s3 = inlined_call_operand.vmem [shape: f32[128,128], index: 3, kind: input, shape index: {}]   ;;  %s1437_s4 = inlined_call_operand.vmem [shape: f32[1,128], index: 4, kind: input, shape index: {}]   ;;  %s1438_s5 = inlined_call_operand.vmem [shape: f32[8,128], index: 5, kind: output, shape index: {}]  }
   0x1   :  { %v567_v0 = vld [vmem:[%s1433_s1 + $0x78] sm:$0xff]  ;;  %v566_v1 = vld [vmem:[%s1433_s1 + $0x70] sm:$0xff]  ;;  %v565_v2 = vld [vmem:[%s1433_s1 + $0x68] sm:$0xff]  ;;  %vm490_vm4 = vcmask 1045509   ;;  %vm492_vm5 = vcmask 1046534   ;;  %vm494_vm6 = vcmask 1047559  }
   0x2   :  { %636 = vmatpush.msra.mxu0 %v567_v0  ;;  %v599_v3 = vld [vmem:[%s1433_s1 + $0x178] sm:$0xff]  ;;  %v564_v4 = vld [vmem:[%s1433_s1 + $0x60] sm:$0xff]  ;;  %v598_v5 = vld [vmem:[%s1433_s1 + $0x170] sm:$0xff] }
   0x3   :  { %676 = vmatpush.msra.mxu2 %v599_v3  ;;  %v615_v6 = vld [vmem:[%s1433_s1 + $0x1f8] sm:$0xff]  ;;  %v597_v8 = vld [vmem:[%s1433_s1 + $0x168] sm:$0xff]  ;;  %v614_v10 = vld [vmem:[%s1433_s1 + $0x1f0] sm:$0xff] }
   0x4   :  { %637 = vmatpush.msra.mxu0 %v566_v1  ;;  %696 = vmatpush.msra.mxu3 %v615_v6  ;;  %v583_v7 = vld [vmem:[%s1433_s1 + $0xf8] sm:$0xff]  ;;  %v582_v11 = vld [vmem:[%s1433_s1 + $0xf0] sm:$0xff]  ;;  %v596_v12 = vld [vmem:[%s1433_s1 + $0x160] sm:$0xff] }
   0x5   :  { %v563_v9 = vld [vmem:[%s1433_s1 + $0x58] sm:$0xff]  ;;  %677 = vmatpush.msra.mxu2 %v598_v5  ;;  %656 = vmatpush.msra.mxu1 %v583_v7  ;;  %v613_v13 = vld [vmem:[%s1433_s1 + $0x1e8] sm:$0xff]  ;;  %v562_v14 = vld [vmem:[%s1433_s1 + $0x50] sm:$0xff] }
   0x6   :  { %638 = vmatpush.msra.mxu0 %v565_v2  ;;  %697 = vmatpush.msra.mxu3 %v614_v10  ;;  %v581_v15 = vld [vmem:[%s1433_s1 + $0xe8] sm:$0xff]  ;;  %v612_v16 = vld [vmem:[%s1433_s1 + $0x1e0] sm:$0xff]  ;;  %v595_v17 = vld [vmem:[%s1433_s1 + $0x158] sm:$0xff] }
   0x7   :  { %678 = vmatpush.msra.mxu2 %v597_v8  ;;  %657 = vmatpush.msra.mxu1 %v582_v11  ;;  %v580_v18 = vld [vmem:[%s1433_s1 + $0xe0] sm:$0xff]  ;;  %v561_v19 = vld [vmem:[%s1433_s1 + $0x48] sm:$0xff]  ;;  %v611_v20 = vld [vmem:[%s1433_s1 + $0x1d8] sm:$0xff] }
   0x8   :  { %639 = vmatpush.msra.mxu0 %v564_v4  ;;  %698 = vmatpush.msra.mxu3 %v613_v13  ;;  %v594_v21 = vld [vmem:[%s1433_s1 + $0x150] sm:$0xff]  ;;  %v579_v22 = vld [vmem:[%s1433_s1 + $0xd8] sm:$0xff]  ;;  %v560_v23 = vld [vmem:[%s1433_s1 + $0x40] sm:$0xff] }
   0x9   :  { %679 = vmatpush.msra.mxu2 %v596_v12  ;;  %658 = vmatpush.msra.mxu1 %v581_v15  ;;  %v610_v24 = vld [vmem:[%s1433_s1 + $0x1d0] sm:$0xff]  ;;  %v593_v25 = vld [vmem:[%s1433_s1 + $0x148] sm:$0xff]  ;;  %v559_v27 = vld [vmem:[%s1433_s1 + $0x38] sm:$0xff] }
   0xa   :  { %640 = vmatpush.msra.mxu0 %v563_v9  ;;  %699 = vmatpush.msra.mxu3 %v612_v16  ;;  %v578_v26 = vld [vmem:[%s1433_s1 + $0xd0] sm:$0xff]  ;;  %v609_v28 = vld [vmem:[%s1433_s1 + $0x1c8] sm:$0xff]  ;;  %v592_v29 = vld [vmem:[%s1433_s1 + $0x140] sm:$0xff] }
   0xb   :  { %680 = vmatpush.msra.mxu2 %v595_v17  ;;  %659 = vmatpush.msra.mxu1 %v580_v18  ;;  %v577_v30 = vld [vmem:[%s1433_s1 + $0xc8] sm:$0xff]  ;;  %v558_v31 = vld [vmem:[%s1433_s1 + $0x30] sm:$0xff]  ;;  %v608_v32 = vld [vmem:[%s1433_s1 + $0x1c0] sm:$0xff] }
   0xc   :  { %641 = vmatpush.msra.mxu0 %v562_v14  ;;  %700 = vmatpush.msra.mxu3 %v611_v20  ;;  %v591_v33 = vld [vmem:[%s1433_s1 + $0x138] sm:$0xff]  ;;  %v576_v34 = vld [vmem:[%s1433_s1 + $0xc0] sm:$0xff]  ;;  %v557_v35 = vld [vmem:[%s1433_s1 + $0x28] sm:$0xff] }
   0xd   :  { %681 = vmatpush.msra.mxu2 %v594_v21  ;;  %660 = vmatpush.msra.mxu1 %v579_v22  ;;  %v607_v36 = vld [vmem:[%s1433_s1 + $0x1b8] sm:$0xff]  ;;  %v590_v37 = vld [vmem:[%s1433_s1 + $0x130] sm:$0xff]  ;;  %v556_v39 = vld [vmem:[%s1433_s1 + $0x20] sm:$0xff] }
   0xe   :  { %642 = vmatpush.msra.mxu0 %v561_v19  ;;  %701 = vmatpush.msra.mxu3 %v610_v24  ;;  %v575_v38 = vld [vmem:[%s1433_s1 + $0xb8] sm:$0xff]  ;;  %v606_v40 = vld [vmem:[%s1433_s1 + $0x1b0] sm:$0xff]  ;;  %v589_v42 = vld [vmem:[%s1433_s1 + $0x128] sm:$0xff] }
   0xf   :  { %682 = vmatpush.msra.mxu2 %v593_v25  ;;  %661 = vmatpush.msra.mxu1 %v578_v26  ;;  %v555_v41 = vld [vmem:[%s1433_s1 + $0x18] sm:$0xff]  ;;  %v574_v43 = vld [vmem:[%s1433_s1 + $0xb0] sm:$0xff]  ;;  %v588_v45 = vld [vmem:[%s1433_s1 + $0x120] sm:$0xff] }
  0x10   :  { %643 = vmatpush.msra.mxu0 %v560_v23  ;;  %702 = vmatpush.msra.mxu3 %v609_v28  ;;  %v554_v44 = vld [vmem:[%s1433_s1 + $0x10] sm:$0xff]  ;;  %v605_v46 = vld [vmem:[%s1433_s1 + $0x1a8] sm:$0xff]  ;;  %v587_v48 = vld [vmem:[%s1433_s1 + $0x118] sm:$0xff] }
  0x11   :  { %683 = vmatpush.msra.mxu2 %v592_v29  ;;  %662 = vmatpush.msra.mxu1 %v577_v30  ;;  %v573_v47 = vld [vmem:[%s1433_s1 + $0xa8] sm:$0xff]  ;;  %v604_v49 = vld [vmem:[%s1433_s1 + $0x1a0] sm:$0xff]  ;;  %v603_v52 = vld [vmem:[%s1433_s1 + $0x198] sm:$0xff] }
  0x12   :  { %644 = vmatpush.msra.mxu0 %v559_v27  ;;  %703 = vmatpush.msra.mxu3 %v608_v32  ;;  %v572_v50 = vld [vmem:[%s1433_s1 + $0xa0] sm:$0xff]  ;;  %v553_v51 = vld [vmem:[%s1433_s1 + $0x8] sm:$0xff]  ;;  %v986_v55 = vld [vmem:[%s1434_s0 + $0x30] sm:$0xff] }
  0x13   :  { %684 = vmatpush.msra.mxu2 %v591_v33  ;;  %663 = vmatpush.msra.mxu1 %v576_v34  ;;  %v976_v53 = vld [vmem:[%s1434_s0 + $0x8] sm:$0xff]  ;;  %v981_v54 = vld [vmem:[%s1434_s0 + $0x1c] sm:$0xff]  ;;  %v586_v56 = vld [vmem:[%s1433_s1 + $0x110] sm:$0xff]  ;;  %v94_v63 = vunpack.c.l.bf16 %v986_v55 }
  0x14   :  { %645 = vmatpush.msra.mxu0 %v558_v31  ;;  %704 = vmatpush.msra.mxu3 %v607_v36  ;;  %v571_v57 = vld [vmem:[%s1433_s1 + $0x98] sm:$0xff]  ;;  %v997_v58 = vld [vmem:[%s1434_s0 + $0x44] sm:$0xff]  ;;  %v1007_v60 = vld [vmem:[%s1434_s0 + $0x6c] sm:$0xff]  ;;  %v84_v61 = vunpack.c.l.bf16 %v976_v53  ;;  %v89_v62 = vunpack.c.l.bf16 %v981_v54 }
  0x15   :  { %685 = vmatpush.msra.mxu2 %v590_v37  ;;  %664 = vmatpush.msra.mxu1 %v575_v38  ;;  %v1002_v59 = vld [vmem:[%s1434_s0 + $0x58] sm:$0xff]  ;;  %v552_v1 = vld [vmem:[%s1433_s1] sm:$0xff]  ;;  %v602_v2 = vld [vmem:[%s1433_s1 + $0x190] sm:$0xff]  ;;  %v99_v6 = vunpack.c.l.bf16 %v997_v58  ;;  %v109_v8 = vunpack.c.l.bf16 %v1007_v60 }
  0x16   :  { %646 = vmatpush.msra.mxu0 %v557_v35  ;;  %705 = vmatpush.msra.mxu3 %v606_v40  ;;  %v1022_v3 = vld [vmem:[%s1434_s0 + $0x80] sm:$0xff]  ;;  %v1027_v4 = vld [vmem:[%s1434_s0 + $0x94] sm:$0xff]  ;;  %v1032_v5 = vld [vmem:[%s1434_s0 + $0xa8] sm:$0xff]  ;;  %v104_v7 = vunpack.c.l.bf16 %v1002_v59  ;;  %v176_v16 = vadd.f32 %v89_v62, %v84_v61 }
  0x17   :  { %686 = vmatpush.msra.mxu2 %v589_v42  ;;  %665 = vmatpush.msra.mxu1 %v574_v43  ;;  %v1041_v10 = vld [vmem:[%s1434_s0 + $0xbc] sm:$0xff]  ;;  %v1046_v11 = vld [vmem:[%s1434_s0 + $0xd0] sm:$0xff]  ;;  %v1051_v12 = vld [vmem:[%s1434_s0 + $0xe4] sm:$0xff]  ;;  %v114_v13 = vunpack.c.l.bf16 %v1022_v3  ;;  %v119_v14 = vunpack.c.l.bf16 %v1027_v4  ;;  %v124_v15 = vunpack.c.l.bf16 %v1032_v5  ;;  %v211_v23 = vadd.f32 %v99_v6, %v94_v63 }
  0x18   :  { %647 = vmatpush.msra.mxu0 %v556_v39  ;;  %706 = vmatpush.msra.mxu3 %v605_v46  ;;  %v1059_v17 = vld [vmem:[%s1434_s0 + $0xf8] sm:$0xff]  ;;  %v1064_v18 = vld [vmem:[%s1434_s0 + $0x10c] sm:$0xff]  ;;  %v1069_v19 = vld [vmem:[%s1434_s0 + $0x120] sm:$0xff]  ;;  %v129_v20 = vunpack.c.l.bf16 %v1041_v10  ;;  %v134_v21 = vunpack.c.l.bf16 %v1046_v11  ;;  %v139_v22 = vunpack.c.l.bf16 %v1051_v12  ;;  %v177_v30 = vrot.slane %v176_v16, 4 }
  0x19   :  { %687 = vmatpush.msra.mxu2 %v588_v45  ;;  %666 = vmatpush.msra.mxu1 %v573_v47  ;;  %v631_v24 = vld [vmem:[%s1433_s1 + $0x278] sm:$0xff]  ;;  %v585_v25 = vld [vmem:[%s1433_s1 + $0x108] sm:$0xff]  ;;  %v144_v27 = vunpack.c.l.bf16 %v1059_v17  ;;  %v149_v28 = vunpack.c.l.bf16 %v1064_v18  ;;  %v154_v29 = vunpack.c.l.bf16 %v1069_v19  ;;  %v570_v31 = vld [vmem:[%s1433_s1 + $0x90] sm:$0xff]  ;;  %v212_v34 = vrot.slane %v211_v23, 4 }
  0x1a   :  { %648 = vmatpush.msra.mxu0 %v555_v41  ;;  %707 = vmatpush.msra.mxu3 %v604_v49  ;;  %v1083_v26 = vld [vmem:[%s1434_s0 + $0x134] sm:$0xff]  ;;  %v601_v32 = vld [vmem:[%s1433_s1 + $0x188] sm:$0xff]  ;;  %v246_v35 = vadd.f32 %v109_v8, %v104_v7  ;;  %v281_v36 = vadd.f32 %v119_v14, %v114_v13  ;;  %v1098_v37 = vld [vmem:[%s1434_s0] sm:$0xff]  ;;  %v178_v40 = vadd.f32 %v177_v30, %v176_v16 }
  0x1b   :  { %688 = vmatpush.msra.mxu2 %v587_v48  ;;  %667 = vmatpush.msra.mxu1 %v572_v50  ;;  %v159_v33 = vunpack.c.l.bf16 %v1083_v26  ;;  %v630_v38 = vld [vmem:[%s1433_s1 + $0x270] sm:$0xff]  ;;  %v584_v39 = vld [vmem:[%s1433_s1 + $0x100] sm:$0xff]  ;;  %v316_v41 = vadd.f32 %v129_v20, %v124_v15  ;;  %v351_v42 = vadd.f32 %v139_v22, %v134_v21  ;;  %v82_v43 = vunpack.c.l.bf16 %v1098_v37  ;;  %v569_v48 = vld [vmem:[%s1433_s1 + $0x88] sm:$0xff] }
  0x1c   :  { %649 = vmatpush.msra.mxu0 %v554_v44  ;;  %708 = vmatpush.msra.mxu3 %v603_v52  ;;  %v213_v44 = vadd.f32 %v212_v34, %v211_v23  ;;  %v247_v45 = vrot.slane %v246_v35, 4  ;;  %v282_v46 = vrot.slane %v281_v36, 4  ;;  %v386_v47 = vadd.f32 %v149_v28, %v144_v27  ;;  %v600_v49 = vld [vmem:[%s1433_s1 + $0x180] sm:$0xff]  ;;  %v629_v50 = vld [vmem:[%s1433_s1 + $0x268] sm:$0xff]  ;;  %v627_v21 = vld [vmem:[%s1433_s1 + $0x258] sm:$0xff] }
  0x1d   :  { %689 = vmatpush.msra.mxu2 %v586_v56  ;;  %668 = vmatpush.msra.mxu1 %v571_v57  ;;  %v317_v52 = vrot.slane %v316_v41, 4  ;;  %v352_v56 = vrot.slane %v351_v42, 4  ;;  %v421_v57 = vadd.f32 %v159_v33, %v154_v29 }
  0x1e   :  { %650 = vmatpush.msra.mxu0 %v553_v51  ;;  %709 = vmatpush.msra.mxu3 %v602_v2  ;;  %v179_v51 = vrot.slane %v178_v40, 2  ;;  %v214_v61 = vrot.slane %v213_v44, 2  ;;  %v248_v62 = vadd.f32 %v247_v45, %v246_v35  ;;  %v283_v63 = vadd.f32 %v282_v46, %v281_v36  ;;  %v628_v2 = vld [vmem:[%s1433_s1 + $0x260] sm:$0xff] }
  0x1f   :  { %690 = vmatpush.msra.mxu2 %v585_v25  ;;  %669 = vmatpush.msra.mxu1 %v570_v31  ;;  %v318_v7 = vadd.f32 %v317_v52, %v316_v41  ;;  %v353_v8 = vadd.f32 %v352_v56, %v351_v42  ;;  %v422_v13 = vrot.slane %v421_v57, 4  ;;  %v1125_v31 = vld [vmem:[%s1434_s0 + $0x14] sm:$0xff]  ;;  %v1133_v42 = vld [vmem:[%s1434_s0 + $0x28] sm:$0xff] }
  0x20   :  { %651 = vmatpush.msra.mxu0 %v552_v1  ;;  %710 = vmatpush.msra.mxu3 %v601_v32  ;;  %v387_v1 = vrot.slane %v386_v47, 4  ;;  %v180_v6 = vadd.f32 %v179_v51, %v178_v40  ;;  %v215_v14 = vadd.f32 %v214_v61, %v213_v44  ;;  %v249_v15 = vrot.slane %v248_v62, 2  ;;  %v626_v32 = vld [vmem:[%s1433_s1 + $0x250] sm:$0xff]  ;;  %v625_v44 = vld [vmem:[%s1433_s1 + $0x248] sm:$0xff]  ;;  %v624_v51 = vld [vmem:[%s1433_s1 + $0x240] sm:$0xff] }
  0x21   :  { %691 = vmatpush.msra.mxu2 %v584_v39  ;;  %670 = vmatpush.msra.mxu1 %v569_v48  ;;  %v284_v16 = vrot.slane %v283_v63, 2  ;;  %v319_v23 = vrot.slane %v318_v7, 2  ;;  %v423_v25 = vadd.f32 %v422_v13, %v421_v57  ;;  %v1141_v48 = vld [vmem:[%s1434_s0 + $0x3c] sm:$0xff] }
  0x22   :  { %716 = vmatpush.msrb.mxu0 %v631_v24  ;;  %711 = vmatpush.msra.mxu3 %v600_v49  ;;  %v388_v20 = vadd.f32 %v387_v1, %v386_v47  ;;  %v181_v22 = vrot.slane %v180_v6, 1  ;;  %v354_v24 = vrot.slane %v353_v8, 2  ;;  %v216_v27 = vrot.slane %v215_v14, 1  ;;  %v1146_v49 = vld [vmem:[%s1434_s0 + $0x50] sm:$0xff]  ;;  %v623_v1 = vld [vmem:[%s1433_s1 + $0x238] sm:$0xff]  ;;  %v1174_v13 = vld [vmem:[%s1434_s0 + $0xa0] sm:$0xff] }
  0x23   :  { %v250_v28 = vadd.f32 %v249_v15, %v248_v62  ;;  %v285_v29 = vadd.f32 %v284_v16, %v283_v63  ;;  %v320_v34 = vadd.f32 %v319_v23, %v318_v7  ;;  %v424_v36 = vrot.slane %v423_v25, 2  ;;  %v1156_v62 = vld [vmem:[%s1434_s0 + $0x64] sm:$0xff]  ;;  %v1161_v63 = vld [vmem:[%s1434_s0 + $0x78] sm:$0xff]  ;;  %v1196_v23 = vld [vmem:[%s1434_s0 + $0xf0] sm:$0xff] }
  0x24   :  { %717 = vmatpush.msrb.mxu0 %v630_v38  ;;  %v389_v30 = vrot.slane %v388_v20, 2  ;;  %v182_v33 = vadd.f32 %v181_v22, %v180_v6  ;;  %v355_v35 = vadd.f32 %v354_v24, %v353_v8  ;;  %v217_v38 = vadd.f32 %v216_v27, %v215_v14  ;;  %v1169_v8 = vld [vmem:[%s1434_s0 + $0x8c] sm:$0xff]  ;;  %v1179_v14 = vld [vmem:[%s1434_s0 + $0xb4] sm:$0xff]  ;;  %v1191_v22 = vld [vmem:[%s1434_s0 + $0xdc] sm:$0xff] }
  0x25   :  { %v251_v39 = vrot.slane %v250_v28, 1  ;;  %v286_v40 = vrot.slane %v285_v29, 1  ;;  %v321_v45 = vrot.slane %v320_v34, 1  ;;  %v425_v47 = vadd.f32 %v424_v36, %v423_v25 }
  0x26   :  { %718 = vmatpush.msrb.mxu0 %v629_v50  ;;  %v390_v41 = vadd.f32 %v389_v30, %v388_v20  ;;  %v356_v46 = vrot.slane %v355_v35, 1  ;;  %v87_v50 = vunpack.c.l.bf16 %v1125_v31  ;;  %v503_v61 = vsel %vm482_vm0, %v217_v38, %v182_v33  ;;  %v1209_v30 = vld [vmem:[%s1434_s0 + $0x118] sm:$0xff] }
  0x27   :  { %v252_v52 = vadd.f32 %v251_v39, %v250_v28  ;;  %v287_v56 = vadd.f32 %v286_v40, %v285_v29  ;;  %v426_v7 = vrot.slane %v425_v47, 1  ;;  %v92_v15 = vunpack.c.l.bf16 %v1133_v42  ;;  %v1204_v29 = vld [vmem:[%s1434_s0 + $0x104] sm:$0xff]  ;;  %1443 = vst [vmem:[#allocation4_spill] sm:$0xff] %v1209_v30  ;;  %v622_v40 = vld [vmem:[%s1433_s1 + $0x230] sm:$0xff] }
  0x28   :  { %719 = vmatpush.msrb.mxu0 %v628_v2  ;;  %v391_v57 = vrot.slane %v390_v41, 1  ;;  %v322_v2 = vadd.f32 %v321_v45, %v320_v34  ;;  %v357_v6 = vadd.f32 %v356_v46, %v355_v35  ;;  %v97_v24 = vunpack.c.l.bf16 %v1141_v48  ;;  %1442 = vst [vmem:[#allocation3_spill] sm:$0xff] %v1204_v29 }
  0x29   :  { %v504_v20 = vsel %vm484_vm1, %v252_v52, %v503_v61  ;;  %v102_v25 = vunpack.c.l.bf16 %v1146_v49  ;;  %v427_v27 = vadd.f32 %v426_v7, %v425_v47  ;;  %v107_v33 = vunpack.c.l.bf16 %v1156_v62 }
  0x2a   :  { %720 = vmatpush.msrb.mxu0 %v627_v21  ;;  %v392_v16 = vadd.f32 %v391_v57, %v390_v41  ;;  %v1186_v21 = vld [vmem:[%s1434_s0 + $0xc8] sm:$0xff]  ;;  %v505_v28 = vsel %vm486_vm2, %v287_v56, %v504_v20  ;;  %v112_v34 = vunpack.c.l.bf16 %v1161_v63  ;;  %v117_v36 = vunpack.c.l.bf16 %v1169_v8 }
  0x2b   :  { %v506_v35 = vsel %vm488_vm3, %v322_v2, %v505_v28  ;;  %v122_v38 = vunpack.c.l.bf16 %v1174_v13  ;;  %v127_v39 = vunpack.c.l.bf16 %v1179_v14  ;;  %v137_v45 = vunpack.c.l.bf16 %v1191_v22  ;;  %v621_v57 = vld [vmem:[%s1433_s1 + $0x228] sm:$0xff] }
  0x2c   :  { %721 = vmatpush.msrb.mxu0 %v626_v32  ;;  %v1214_v32 = vld [vmem:[%s1434_s0 + $0x12c] sm:$0xff]  ;;  %v507_v41 = vsel %vm490_vm4, %v357_v6, %v506_v35  ;;  %v142_v46 = vunpack.c.l.bf16 %v1196_v23  ;;  %v152_v52 = vunpack.c.l.bf16 %v1209_v30  ;;  %v162_v2 = vadd.f32 %v87_v50, %v82_v43  ;;  %v620_v35 = vld [vmem:[%s1433_s1 + $0x220] sm:$0xff] }
  0x2d   :  { %1444 = vst [vmem:[#allocation5_spill] sm:$0xff] %v1214_v32  ;;  %v508_v47 = vsel %vm492_vm5, %v392_v16, %v507_v41  ;;  %v157_v56 = vunpack.c.l.bf16 %v1214_v32  ;;  %v197_v6 = vadd.f32 %v97_v24, %v92_v15  ;;  %v232_v7 = vadd.f32 %v107_v33, %v102_v25 }
  0x2e   :  { %722 = vmatpush.msrb.mxu0 %v625_v44  ;;  %v132_v44 = vunpack.c.l.bf16 %v1186_v21  ;;  %v509_v61 = vsel %vm494_vm6, %v427_v27, %v508_v47  ;;  %v267_v16 = vadd.f32 %v117_v36, %v112_v34  ;;  %v302_v20 = vadd.f32 %v127_v39, %v122_v38 }
  0x2f   :  { %v163_v41 = vrot.slane %v162_v2, 4  ;;  %v198_v9 = vrot.slane %v197_v6, 4  ;;  %v233_v0 = vrot.slane %v232_v7, 4  ;;  %v407_v50 = vadd.f32 %v157_v56, %v152_v52 }
  0x30   :  { %723 = vmatpush.msrb.mxu0 %v624_v51  ;;  %v147_v51 = vunpack.c.l.bf16 %v1204_v29  ;;  %v337_v28 = vadd.f32 %v137_v45, %v132_v44  ;;  %v268_v27 = vrot.slane %v267_v16, 4  ;;  %v303_v47 = vrot.slane %v302_v20, 4 }
  0x31   :  { %v164_v15 = vadd.f32 %v163_v41, %v162_v2  ;;  %v199_v24 = vadd.f32 %v198_v9, %v197_v6  ;;  %v234_v25 = vadd.f32 %v233_v0, %v232_v7  ;;  %v408_v39 = vrot.slane %v407_v50, 4 }
  0x32   :  { %724 = vmatpush.msrb.mxu0 %v623_v1  ;;  %v549_v1 = vmul.f32 0.0625, %v509_v61  ;;  %v372_v32 = vadd.f32 %v147_v51, %v142_v46  ;;  %v338_v43 = vrot.slane %v337_v28, 4  ;;  %v269_v34 = vadd.f32 %v268_v27, %v267_v16 }
  0x33   :  { %v304_v36 = vadd.f32 %v303_v47, %v302_v20  ;;  %v200_v44 = vrot.slane %v199_v24, 2  ;;  %v235_v45 = vrot.slane %v234_v25, 2 }
  0x34   :  { %725 = vmatpush.msrb.mxu0 %v622_v40  ;;  %692 = vmatmul.f32.vlgmr.msra.gmra.mxu2 %v549_v1  ;;  %v373_v33 = vrot.slane %v372_v32, 4  ;;  %v339_v38 = vadd.f32 %v338_v43, %v337_v28  ;;  %v165_v40 = vrot.slane %v164_v15, 2  ;;  %v270_v46 = vrot.slane %v269_v34, 2 }
  0x35   :  { %v305_v51 = vrot.slane %v304_v36, 2  ;;  %v409_v1 = vadd.f32 %v408_v39, %v407_v50  ;;  %v201_v29 = vadd.f32 %v200_v44, %v199_v24  ;;  %v236_v52 = vadd.f32 %v235_v45, %v234_v25 }
  0x36   :  { %726 = vmatpush.msrb.mxu0 %v621_v57  ;;  %v374_v61 = vadd.f32 %v373_v33, %v372_v32  ;;  %v340_v57 = vrot.slane %v339_v38, 2  ;;  %v166_v30 = vadd.f32 %v165_v40, %v164_v15  ;;  %v271_v9 = vadd.f32 %v270_v46, %v269_v34  ;;  %v568_v32 = vld [vmem:[%s1433_s1 + $0x80] sm:$0xff] }
  0x37   :  { %v306_v0 = vadd.f32 %v305_v51, %v304_v36  ;;  %v410_v6 = vrot.slane %v409_v1, 2  ;;  %v202_v16 = vrot.slane %v201_v29, 1  ;;  %v237_v20 = vrot.slane %v236_v52, 1  ;;  %671 = vmatpush.msra.mxu1 %v568_v32 }
  0x38   :  { %727 = vmatpush.msrb.mxu0 %v620_v35  ;;  %v375_v56 = vrot.slane %v374_v61, 2  ;;  %v341_v2 = vadd.f32 %v340_v57, %v339_v38  ;;  %v167_v7 = vrot.slane %v166_v30, 1  ;;  %v619_v35 = vld [vmem:[%s1433_s1 + $0x218] sm:$0xff]  ;;  %v272_v41 = vrot.slane %v271_v9, 1 }
  0x39   :  { %v307_v27 = vrot.slane %v306_v0, 1  ;;  %v411_v43 = vadd.f32 %v410_v6, %v409_v1  ;;  %v203_v15 = vadd.f32 %v202_v16, %v201_v29  ;;  %v238_v24 = vadd.f32 %v237_v20, %v236_v52 }
  0x3a   :  { %v376_v28 = vadd.f32 %v375_v56, %v374_v61  ;;  %v342_v47 = vrot.slane %v341_v2, 1  ;;  %728 = vmatpush.msrb.mxu0 %v619_v35  ;;  %v168_v50 = vadd.f32 %v167_v7, %v166_v30  ;;  %v273_v33 = vadd.f32 %v272_v41, %v271_v9 }
  0x3b   :  { %v308_v34 = vadd.f32 %v307_v27, %v306_v0  ;;  %v412_v38 = vrot.slane %v411_v43, 1  ;;  %v95_v44 = vunpack.c.h.bf16 %v986_v55  ;;  %v100_v45 = vunpack.c.h.bf16 %v997_v58 }
  0x3c   :  { %v377_v25 = vrot.slane %v376_v28, 1  ;;  %v343_v36 = vadd.f32 %v342_v47, %v341_v2  ;;  %v483_v40 = vsel %vm482_vm0, %v203_v15, %v168_v50  ;;  %v105_v51 = vunpack.c.h.bf16 %v1002_v59 }
  0x3d   :  { %v413_v61 = vadd.f32 %v412_v38, %v411_v43  ;;  %v485_v46 = vsel %vm484_vm1, %v238_v24, %v483_v40  ;;  %v110_v29 = vunpack.c.h.bf16 %v1007_v60  ;;  %v115_v57 = vunpack.c.h.bf16 %v1022_v3 }
  0x3e   :  { %v378_v39 = vadd.f32 %v377_v25, %v376_v28  ;;  %v487_v30 = vsel %vm486_vm2, %v273_v33, %v485_v46  ;;  %v120_v1 = vunpack.c.h.bf16 %v1027_v4  ;;  %v125_v52 = vunpack.c.h.bf16 %v1032_v5 }
  0x3f   :  { %v489_v56 = vsel %vm488_vm3, %v308_v34, %v487_v30  ;;  %v130_v55 = vunpack.c.h.bf16 %v1041_v10  ;;  %v135_v58 = vunpack.c.h.bf16 %v1046_v11  ;;  %v140_v9 = vunpack.c.h.bf16 %v1051_v12 }
  0x40   :  { %v491_v59 = vsel %vm490_vm4, %v343_v36, %v489_v56  ;;  %v145_v60 = vunpack.c.h.bf16 %v1059_v17  ;;  %v150_v0 = vunpack.c.h.bf16 %v1064_v18  ;;  %v155_v3 = vunpack.c.h.bf16 %v1069_v19 }
  0x41   :  { %v493_v4 = vsel %vm492_vm5, %v378_v39, %v491_v59  ;;  %v160_v5 = vunpack.c.h.bf16 %v1083_v26  ;;  %v1445_v2 = vunpack.c.h.bf16 %v976_v53  ;;  %v1446_v10 = vunpack.c.h.bf16 %v981_v54 }
  0x42   :  { %v218_v11 = vadd.f32 %v100_v45, %v95_v44  ;;  %v495_v12 = vsel %vm494_vm6, %v413_v61, %v493_v4  ;;  %v253_v7 = vadd.f32 %v110_v29, %v105_v51  ;;  %v288_v16 = vadd.f32 %v120_v1, %v115_v57 }
  0x43   :  { %v183_v6 = vadd.f32 %v1446_v10, %v1445_v2  ;;  %v323_v20 = vadd.f32 %v130_v55, %v125_v52  ;;  %v547_v17 = vmul.f32 0.0625, %v495_v12  ;;  %v358_v32 = vadd.f32 %v140_v9, %v135_v58  ;;  %v618_v10 = vld [vmem:[%s1433_s1 + $0x210] sm:$0xff] }
  0x44   :  { %v219_v18 = vrot.slane %v218_v11, 4  ;;  %v254_v19 = vrot.slane %v253_v7, 4  ;;  %v289_v35 = vrot.slane %v288_v16, 4  ;;  %v393_v27 = vadd.f32 %v150_v0, %v145_v60  ;;  %729 = vmatpush.msrb.mxu0 %v618_v10 }
  0x45   :  { %v184_v28 = vrot.slane %v183_v6, 4  ;;  %v324_v41 = vrot.slane %v323_v20, 4  ;;  %652 = vmatmul.f32.vlgmr.msra.gmra.mxu0 %v547_v17  ;;  %v359_v47 = vrot.slane %v358_v32, 4  ;;  %v428_v54 = vadd.f32 %v160_v5, %v155_v3 }
  0x46   :  { %v220_v53 = vadd.f32 %v219_v18, %v218_v11  ;;  %v255_v43 = vadd.f32 %v254_v19, %v253_v7  ;;  %v290_v50 = vadd.f32 %v289_v35, %v288_v16  ;;  %v394_v24 = vrot.slane %v393_v27, 4 }
  0x47   :  { %v185_v26 = vadd.f32 %v184_v28, %v183_v6  ;;  %v325_v15 = vadd.f32 %v324_v41, %v323_v20  ;;  %v360_v34 = vadd.f32 %v359_v47, %v358_v32  ;;  %v429_v36 = vrot.slane %v428_v54, 4  ;;  %v617_v6 = vld [vmem:[%s1433_s1 + $0x208] sm:$0xff]  ;;  %v616_v32 = vld [vmem:[%s1433_s1 + $0x200] sm:$0xff] }
  0x48   :  { %v221_v33 = vrot.slane %v220_v53, 2  ;;  %v256_v38 = vrot.slane %v255_v43, 2  ;;  %v291_v39 = vrot.slane %v290_v50, 2  ;;  %v395_v44 = vadd.f32 %v394_v24, %v393_v27  ;;  %730 = vmatpush.msrb.mxu0 %v617_v6 }
  0x49   :  { %v186_v25 = vrot.slane %v185_v26, 2  ;;  %v326_v40 = vrot.slane %v325_v15, 2  ;;  %v361_v46 = vrot.slane %v360_v34, 2  ;;  %v430_v51 = vadd.f32 %v429_v36, %v428_v54 }
  0x4a   :  { %v222_v61 = vadd.f32 %v221_v33, %v220_v53  ;;  %v257_v29 = vadd.f32 %v256_v38, %v255_v43  ;;  %v292_v30 = vadd.f32 %v291_v39, %v290_v50  ;;  %v396_v1 = vrot.slane %v395_v44, 2  ;;  %731 = vmatpush.msrb.mxu0 %v616_v32  ;;  %v1449_v38 = vld [vmem:[#allocation5_spill] sm:$0xff] }
  0x4b   :  { %v187_v45 = vadd.f32 %v186_v25, %v185_v26  ;;  %v327_v57 = vadd.f32 %v326_v40, %v325_v15  ;;  %v362_v55 = vadd.f32 %v361_v46, %v360_v34  ;;  %v431_v58 = vrot.slane %v430_v51, 2  ;;  %v1308_v32 = vld [vmem:[%s1434_s0 + $0x10] sm:$0xf] }
  0x4c   :  { %v223_v56 = vrot.slane %v222_v61, 1  ;;  %v258_v9 = vrot.slane %v257_v29, 1  ;;  %v293_v59 = vrot.slane %v292_v30, 1  ;;  %v397_v0 = vadd.f32 %v396_v1, %v395_v44 }
  0x4d   :  { %v188_v52 = vrot.slane %v187_v45, 1  ;;  %v328_v60 = vrot.slane %v327_v57, 1  ;;  %v363_v5 = vrot.slane %v362_v55, 1  ;;  %v432_v2 = vadd.f32 %v431_v58, %v430_v51 }
  0x4e   :  { %v224_v4 = vadd.f32 %v223_v56, %v222_v61  ;;  %v259_v11 = vadd.f32 %v258_v9, %v257_v29  ;;  %v294_v12 = vadd.f32 %v293_v59, %v292_v30  ;;  %v398_v16 = vrot.slane %v397_v0, 1 }
  0x4f   :  { %v189_v3 = vadd.f32 %v188_v52, %v187_v45  ;;  %v329_v7 = vadd.f32 %v328_v60, %v327_v57  ;;  %v364_v20 = vadd.f32 %v363_v5, %v362_v55  ;;  %v433_v17 = vrot.slane %v432_v2, 1 }
  0x50   :  { %v83_v18 = vunpack.c.h.bf16 %v1098_v37  ;;  %v399_v19 = vadd.f32 %v398_v16, %v397_v0  ;;  %v88_v41 = vunpack.c.h.bf16 %v1125_v31  ;;  %v93_v27 = vunpack.c.h.bf16 %v1133_v42 }
  0x51   :  { %v510_v28 = vsel %vm482_vm0, %v224_v4, %v189_v3  ;;  %v434_v26 = vadd.f32 %v433_v17, %v432_v2  ;;  %v98_v47 = vunpack.c.h.bf16 %v1141_v48  ;;  %v103_v54 = vunpack.c.h.bf16 %v1146_v49 }
  0x52   :  { %v511_v35 = vsel %vm484_vm1, %v259_v11, %v510_v28  ;;  %v108_v43 = vunpack.c.h.bf16 %v1156_v62  ;;  %v113_v50 = vunpack.c.h.bf16 %v1161_v63  ;;  %v118_v15 = vunpack.c.h.bf16 %v1169_v8  ;;  %v1447_v62 = vld [vmem:[#allocation3_spill] sm:$0xff]  ;;  %v1448_v8 = vld [vmem:[#allocation4_spill] sm:$0xff] }
  0x53   :  { %v512_v53 = vsel %vm486_vm2, %v294_v12, %v511_v35  ;;  %v123_v42 = vunpack.c.h.bf16 %v1174_v13  ;;  %v128_v24 = vunpack.c.h.bf16 %v1179_v14  ;;  %v133_v25 = vunpack.c.h.bf16 %v1186_v21 }
  0x54   :  { %v513_v37 = vsel %vm488_vm3, %v329_v7, %v512_v53  ;;  %v138_v49 = vunpack.c.h.bf16 %v1191_v22  ;;  %v143_v33 = vunpack.c.h.bf16 %v1196_v23  ;;  %v148_v34 = vunpack.c.h.bf16 %v1447_v62  ;;  %v1318_v53 = vld [vmem:[%s1434_s0 + $0x38] sm:$0xf] }
  0x55   :  { %v514_v31 = vsel %vm490_vm4, %v364_v20, %v513_v37  ;;  %v153_v36 = vunpack.c.h.bf16 %v1448_v8  ;;  %v158_v39 = vunpack.c.h.bf16 %v1449_v38  ;;  %v169_v40 = vadd.f32 %v88_v41, %v83_v18  ;;  %v51_v8 = vld [vmem:[%s1434_s0 + $0x74] sm:$0xf]  ;;  %v750_v38 = vld [vmem:[%s1436_s3 + $0x68] sm:$0xff] }
  0x56   :  { %v515_v48 = vsel %vm492_vm5, %v399_v19, %v514_v31  ;;  %v204_v44 = vadd.f32 %v98_v47, %v93_v27  ;;  %v239_v14 = vadd.f32 %v108_v43, %v103_v54  ;;  %v274_v45 = vadd.f32 %v118_v15, %v113_v50  ;;  %v45_v50 = vld [vmem:[%s1434_s0 + $0x4c] sm:$0xf]  ;;  %v752_v15 = vld [vmem:[%s1436_s3 + $0x78] sm:$0xff]  ;;  %v751_v31 = vld [vmem:[%s1436_s3 + $0x70] sm:$0xff] }
  0x57   :  { %v516_v63 = vsel %vm494_vm6, %v434_v26, %v515_v48  ;;  %v170_v21 = vrot.slane %v169_v40, 4  ;;  %v309_v61 = vadd.f32 %v128_v24, %v123_v42  ;;  %v344_v46 = vadd.f32 %v138_v49, %v133_v25  ;;  %v1313_v26 = vld [vmem:[%s1434_s0 + $0x24] sm:$0xf]  ;;  %v48_v49 = vld [vmem:[%s1434_s0 + $0x60] sm:$0xf]  ;;  %757 = vmatpush.msrb.mxu1 %v752_v15 }
  0x58   :  { %v550_v13 = vmul.f32 0.0625, %v516_v63  ;;  %v379_v51 = vadd.f32 %v148_v34, %v143_v33  ;;  %v205_v22 = vrot.slane %v204_v44, 4  ;;  %v240_v23 = vrot.slane %v239_v14, 4 }
  0x59   :  { %v275_v29 = vrot.slane %v274_v45, 4  ;;  %v414_v30 = vadd.f32 %v158_v39, %v153_v36  ;;  %v171_v57 = vadd.f32 %v170_v21, %v169_v40  ;;  %v310_v1 = vrot.slane %v309_v61, 4  ;;  %v54_v36 = vld [vmem:[%s1434_s0 + $0x88] sm:$0xf]  ;;  %758 = vmatpush.msrb.mxu1 %v751_v31 }
  0x5a   :  { %712 = vmatmul.f32.vlgmr.msra.gmra.mxu3 %v550_v13  ;;  %v345_v52 = vrot.slane %v344_v46, 4  ;;  %v380_v56 = vrot.slane %v379_v51, 4  ;;  %v206_v55 = vadd.f32 %v205_v22, %v204_v44  ;;  %v241_v58 = vadd.f32 %v240_v23, %v239_v14  ;;  %v57_v44 = vld [vmem:[%s1434_s0 + $0x9c] sm:$0xf]  ;;  %v60_v14 = vld [vmem:[%s1434_s0 + $0xb0] sm:$0xf] }
  0x5b   :  { %v276_v9 = vadd.f32 %v275_v29, %v274_v45  ;;  %v415_v59 = vrot.slane %v414_v30, 4  ;;  %v172_v60 = vrot.slane %v171_v57, 2  ;;  %v311_v0 = vadd.f32 %v310_v1, %v309_v61  ;;  %v63_v45 = vld [vmem:[%s1434_s0 + $0xc4] sm:$0xf]  ;;  %v69_v22 = vld [vmem:[%s1434_s0 + $0xec] sm:$0xf]  ;;  %759 = vmatpush.msrb.mxu1 %v750_v38 }
  0x5c   :  { %v346_v3 = vadd.f32 %v345_v52, %v344_v46  ;;  %v381_v4 = vadd.f32 %v380_v56, %v379_v51  ;;  %v207_v5 = vrot.slane %v206_v55, 2  ;;  %v242_v2 = vrot.slane %v241_v58, 2  ;;  %v66_v51 = vld [vmem:[%s1434_s0 + $0xd8] sm:$0xf]  ;;  %v72_v1 = vld [vmem:[%s1434_s0 + $0x100] sm:$0xf] }
  0x5d   :  { %v277_v10 = vrot.slane %v276_v9, 2  ;;  %v416_v6 = vadd.f32 %v415_v59, %v414_v30  ;;  %v173_v11 = vadd.f32 %v172_v60, %v171_v57  ;;  %v312_v12 = vrot.slane %v311_v0, 2  ;;  %v749_v30 = vld [vmem:[%s1436_s3 + $0x60] sm:$0xff]  ;;  %v75_v52 = vld [vmem:[%s1434_s0 + $0x114] sm:$0xf] }
  0x5e   :  { %v347_v7 = vrot.slane %v346_v3, 2  ;;  %v382_v16 = vrot.slane %v381_v4, 2  ;;  %v208_v20 = vadd.f32 %v207_v5, %v206_v55  ;;  %v243_v17 = vadd.f32 %v242_v2, %v241_v58  ;;  %v78_v56 = vld [vmem:[%s1434_s0 + $0x128] sm:$0xf]  ;;  %v81_v60 = vld [vmem:[%s1434_s0 + $0x13c] sm:$0xf]  ;;  %760 = vmatpush.msrb.mxu1 %v749_v30 }
  0x5f   :  { %v278_v28 = vadd.f32 %v277_v10, %v276_v9  ;;  %v417_v18 = vrot.slane %v416_v6, 2  ;;  %v174_v19 = vrot.slane %v173_v11, 1  ;;  %v313_v35 = vadd.f32 %v312_v12, %v311_v0  ;;  %v748_v5 = vld [vmem:[%s1436_s3 + $0x58] sm:$0xff] }
  0x60   :  { %v348_v41 = vadd.f32 %v347_v7, %v346_v3  ;;  %v383_v27 = vadd.f32 %v382_v16, %v381_v4  ;;  %v209_v47 = vrot.slane %v208_v20, 1  ;;  %v244_v54 = vrot.slane %v243_v17, 1  ;;  %761 = vmatpush.msrb.mxu1 %v748_v5 }
  0x61   :  { %v279_v37 = vrot.slane %v278_v28, 1  ;;  %v418_v43 = vadd.f32 %v417_v18, %v416_v6  ;;  %v175_v42 = vadd.f32 %v174_v19, %v173_v11  ;;  %v314_v24 = vrot.slane %v313_v35, 1 }
  0x62   :  { %v349_v25 = vrot.slane %v348_v41, 1  ;;  %v384_v48 = vrot.slane %v383_v27, 1  ;;  %v210_v33 = vadd.f32 %v209_v47, %v208_v20  ;;  %v245_v62 = vadd.f32 %v244_v54, %v243_v17  ;;  %v747_v17 = vld [vmem:[%s1436_s3 + $0x50] sm:$0xff] }
  0x63   :  { %v280_v34 = vadd.f32 %v279_v37, %v278_v28  ;;  %v419_v63 = vrot.slane %v418_v43, 1  ;;  %v315_v39 = vadd.f32 %v314_v24, %v313_v35  ;;  %v86_v21 = vunpack.c.l.bf16 %v1308_v32  ;;  %762 = vmatpush.msrb.mxu1 %v747_v17 }
  0x64   :  { %v350_v40 = vadd.f32 %v349_v25, %v348_v41  ;;  %v385_v13 = vadd.f32 %v384_v48, %v383_v27  ;;  %v496_v46 = vsel %vm482_vm0, %v210_v33, %v175_v42  ;;  %v91_v23 = vunpack.c.l.bf16 %v1313_v26  ;;  %v745_v33 = vld [vmem:[%s1436_s3 + $0x40] sm:$0xff] }
  0x65   :  { %v420_v61 = vadd.f32 %v419_v63, %v418_v43  ;;  %v96_v29 = vunpack.c.l.bf16 %v1318_v53  ;;  %v497_v57 = vsel %vm484_vm1, %v245_v62, %v496_v46  ;;  %v101_v55 = vunpack.c.l.bf16 %v45_v50  ;;  %v746_v43 = vld [vmem:[%s1436_s3 + $0x48] sm:$0xff] }
  0x66   :  { %v106_v58 = vunpack.c.l.bf16 %v48_v49  ;;  %v111_v9 = vunpack.c.l.bf16 %v51_v8  ;;  %v498_v59 = vsel %vm486_vm2, %v280_v34, %v497_v57  ;;  %v116_v0 = vunpack.c.l.bf16 %v54_v36  ;;  %763 = vmatpush.msrb.mxu1 %v746_v43  ;;  %v738_v43 = vld [vmem:[%s1436_s3 + $0x8] sm:$0xff] }
  0x67   :  { %v121_v3 = vunpack.c.l.bf16 %v57_v44  ;;  %v126_v4 = vunpack.c.l.bf16 %v60_v14  ;;  %v499_v2 = vsel %vm488_vm3, %v315_v39, %v498_v59  ;;  %v131_v10 = vunpack.c.l.bf16 %v63_v45 }
  0x68   :  { %v136_v6 = vunpack.c.l.bf16 %v66_v51  ;;  %v141_v11 = vunpack.c.l.bf16 %v69_v22  ;;  %v500_v12 = vsel %vm490_vm4, %v350_v40, %v499_v2  ;;  %v146_v7 = vunpack.c.l.bf16 %v72_v1  ;;  %764 = vmatpush.msrb.mxu1 %v745_v33 }
  0x69   :  { %v151_v16 = vunpack.c.l.bf16 %v75_v52  ;;  %v156_v20 = vunpack.c.l.bf16 %v78_v56  ;;  %v501_v28 = vsel %vm492_vm5, %v385_v13, %v500_v12  ;;  %v161_v18 = vunpack.c.l.bf16 %v81_v60  ;;  %v744_v13 = vld [vmem:[%s1436_s3 + $0x38] sm:$0xff] }
  0x6a   :  { %v190_v32 = vadd.f32 %v91_v23, %v86_v21  ;;  %v225_v19 = vadd.f32 %v101_v55, %v96_v29  ;;  %v502_v35 = vsel %vm494_vm6, %v420_v61, %v501_v28  ;;  %v260_v41 = vadd.f32 %v111_v9, %v106_v58  ;;  %765 = vmatpush.msrb.mxu1 %v744_v13 }
  0x6b   :  { %v295_v27 = vadd.f32 %v121_v3, %v116_v0  ;;  %v330_v26 = vadd.f32 %v131_v10, %v126_v4  ;;  %v548_v53 = vmul.f32 0.0625, %v502_v35  ;;  %v365_v37 = vadd.f32 %v141_v11, %v136_v6 }
  0x6c   :  { %v191_v47 = vrot.slane %v190_v32, 4  ;;  %v226_v54 = vrot.slane %v225_v19, 4  ;;  %v261_v50 = vrot.slane %v260_v41, 4  ;;  %v400_v42 = vadd.f32 %v151_v16, %v146_v7 }
  0x6d   :  { %v296_v15 = vrot.slane %v295_v27, 4  ;;  %v331_v31 = vrot.slane %v330_v26, 4  ;;  %672 = vmatmul.f32.vlgmr.msra.gmra.mxu1 %v548_v53  ;;  %v366_v48 = vrot.slane %v365_v37, 4  ;;  %v435_v49 = vadd.f32 %v161_v18, %v156_v20  ;;  %v742_v53 = vld [vmem:[%s1436_s3 + $0x28] sm:$0xff] }
  0x6e   :  { %v192_v24 = vadd.f32 %v191_v47, %v190_v32  ;;  %v227_v25 = vadd.f32 %v226_v54, %v225_v19  ;;  %v262_v62 = vadd.f32 %v261_v50, %v260_v41  ;;  %v401_v8 = vrot.slane %v400_v42, 4  ;;  %v741_v47 = vld [vmem:[%s1436_s3 + $0x20] sm:$0xff]  ;;  %v740_v54 = vld [vmem:[%s1436_s3 + $0x18] sm:$0xff] }
  0x6f   :  { %v297_v34 = vadd.f32 %v296_v15, %v295_v27  ;;  %v332_v63 = vadd.f32 %v331_v31, %v330_v26  ;;  %v367_v39 = vadd.f32 %v366_v48, %v365_v37  ;;  %v436_v40 = vrot.slane %v435_v49, 4  ;;  %v743_v26 = vld [vmem:[%s1436_s3 + $0x30] sm:$0xff]  ;;  %v737_v50 = vld [vmem:[%s1436_s3] sm:$0xff] }
  0x70   :  { %v193_v36 = vrot.slane %v192_v24, 2  ;;  %v228_v38 = vrot.slane %v227_v25, 2  ;;  %v263_v44 = vrot.slane %v262_v62, 2  ;;  %v402_v21 = vadd.f32 %v401_v8, %v400_v42  ;;  %766 = vmatpush.msrb.mxu1 %v743_v26  ;;  %v739_v37 = vld [vmem:[%s1436_s3 + $0x10] sm:$0xff]  ;;  %v782_v15 = vld [vmem:[%s1435_s2] ss:$0 sm:$0xff] }
  0x71   :  { %v298_v14 = vrot.slane %v297_v34, 2  ;;  %v333_v45 = vrot.slane %v332_v63, 2  ;;  %v368_v51 = vrot.slane %v367_v39, 2  ;;  %v437_v22 = vadd.f32 %v436_v40, %v435_v49 }
  0x72   :  { %v194_v61 = vadd.f32 %v193_v36, %v192_v24  ;;  %v229_v46 = vadd.f32 %v228_v38, %v227_v25  ;;  %v264_v23 = vadd.f32 %v263_v44, %v262_v62  ;;  %v403_v57 = vrot.slane %v402_v21, 2  ;;  %767 = vmatpush.msrb.mxu1 %v742_v53  ;;  %v783_v36 = vld [vmem:[%s1437_s4] ss:$0 sm:$0xff] }
  0x73   :  { %v299_v29 = vadd.f32 %v298_v14, %v297_v34  ;;  %v334_v30 = vadd.f32 %v333_v45, %v332_v63  ;;  %v369_v56 = vadd.f32 %v368_v51, %v367_v39  ;;  %v438_v55 = vrot.slane %v437_v22, 2 }
  0x74   :  { %v195_v1 = vrot.slane %v194_v61, 1  ;;  %v230_v52 = vrot.slane %v229_v46, 1  ;;  %v265_v58 = vrot.slane %v264_v23, 1  ;;  %v404_v60 = vadd.f32 %v403_v57, %v402_v21  ;;  %768 = vmatpush.msrb.mxu1 %v741_v47 }
  0x75   :  { %v300_v9 = vrot.slane %v299_v29, 1  ;;  %v335_v59 = vrot.slane %v334_v30, 1  ;;  %v370_v4 = vrot.slane %v369_v56, 1  ;;  %v439_v5 = vadd.f32 %v438_v55, %v437_v22 }
  0x76   :  { %v196_v0 = vadd.f32 %v195_v1, %v194_v61  ;;  %v231_v3 = vadd.f32 %v230_v52, %v229_v46  ;;  %v266_v2 = vadd.f32 %v265_v58, %v264_v23  ;;  %v405_v11 = vrot.slane %v404_v60, 1  ;;  %769 = vmatpush.msrb.mxu1 %v740_v54 }
  0x77   :  { %v301_v10 = vadd.f32 %v300_v9, %v299_v29  ;;  %v336_v6 = vadd.f32 %v335_v59, %v334_v30  ;;  %v371_v12 = vadd.f32 %v370_v4, %v369_v56  ;;  %v440_v7 = vrot.slane %v439_v5, 1 }
  0x78   :  { %v517_v16 = vsel %vm482_vm0, %v231_v3, %v196_v0  ;;  %v406_v20 = vadd.f32 %v405_v11, %v404_v60  ;;  %770 = vmatpush.msrb.mxu1 %v739_v37 }
  0x79   :  { %v518_v17 = vsel %vm484_vm1, %v266_v2, %v517_v16  ;;  %v441_v28 = vadd.f32 %v440_v7, %v439_v5 }
  0x7a   :  { %v519_v18 = vsel %vm486_vm2, %v301_v10, %v518_v17  ;;  %771 = vmatpush.msrb.mxu1 %v738_v43 }
  0x7b   :  { %v520_v32 = vsel %vm488_vm3, %v336_v6, %v519_v18 }
  0x7c   :  { %v521_v19 = vsel %vm490_vm4, %v371_v12, %v520_v32  ;;  %772 = vmatpush.msrb.mxu1 %v737_v50 }
  0x7d   :  { %v522_v35 = vsel %vm492_vm5, %v406_v20, %v521_v19 }
  0x7e   :  { %v523_v41 = vsel %vm494_vm6, %v441_v28, %v522_v35 }
  0x7f   :  { %v551_v27 = vmul.f32 0.0625, %v523_v41 }
  0x81   :  { %732 = vmatmul.f32.vlgmr.msrb.gmra.mxu0 %v551_v27 }
  0xb7   :  { %v693_v48 = vpop.f32.mrf.mxu2 }
  0xc2   :  { %v653_v31 = vpop.f32.mrf.mxu0 }
  0xc3   :  { %v654_v42 = vadd.f32 %v782_v15, %v653_v31 }
  0xdd   :  { %v713_v33 = vpop.f32.mrf.mxu3 }
  0xea   :  { %v673_v24 = vpop.f32.mrf.mxu1 }
  0xeb   :  { %v674_v25 = vadd.f32 %v673_v24, %v654_v42 }
  0xed   :  { %v694_v49 = vadd.f32 %v693_v48, %v674_v25 }
  0xef   :  { %v714_v62 = vadd.f32 %v713_v33, %v694_v49 }
  0xfe   :  { %v733_v34 = vpop.f32.mrf.mxu0 }
  0xff   :  { %v734_v63 = vadd.f32 %v733_v34, %v714_v62 }
 0x101   :  { %v736_v8 = vmax.f32 %v734_v63, 0.0 }
 0x103   :  { %773 = vmatmul.f32.vlgmr.msrb.gmra.mxu1 %v736_v8 }
 0x180   :  { %v774_v38 = vpop.f32.mrf.mxu1 }
 0x181   :  { %v775_v39 = vadd.f32 %v783_v36, %v774_v38 }
 0x183   :  { %777 = vst [vmem:[%s1438_s5] sm:$0xff] %v775_v39 }

</bundles_post_ra>
